<compile_context>
chip_gen: v6e
topology: v6e:2x2x1
jax: 0.10.0
libtpu: 0.0.40
codegen_flags: <defaults>
</compile_context>

<pallas_src>
import math

import jax
import jax.numpy as jnp
from jax.experimental import pallas as pl

# --- small, module-consistent shapes -----------------------------------------
B = 2          # batch
S = 8          # sequence length
D = 32         # d_model
NH = 4         # nhead
DK = D // NH   # d_k
F = 64         # dim_feedforward
EPS = 1e-5     # nn.LayerNorm default eps

BS = B * S           # 16  flattened activation rows
NR = NH * BS         # 64  stacked attention rows, order (head, batch, seq)
CTR = NH * D + 8     # 136 contraction lanes for the stacked QKV matmul
                     #     (lanes NH*D + h hold the one-hot head id -> folds bias)

# packed parameter rows (each at lane offset 0 of a (7, 128) array)
ROW_BO, ROW_B1, ROW_B2, ROW_G1, ROW_BE1, ROW_G2, ROW_BE2 = range(7)


def encoder_layer_kernel(x_rep_ref, bias_ref, wqkv_ref, wo_ref, w1_ref, w2_ref,
                         pvec_ref, o_ref):
    x_rep = x_rep_ref[...]                       # (NR, CTR)
    x = x_rep[0:BS, 0:D]                         # (BS, D) original input (head-0 block)
    p = pvec_ref[...]                            # (7, 128) lane-0 aligned params

    b_o = p[ROW_BO, 0:D]
    b_1 = p[ROW_B1, 0:F]
    b_2 = p[ROW_B2, 0:D]
    g1 = p[ROW_G1, 0:D]
    be1 = p[ROW_BE1, 0:D]
    g2 = p[ROW_G2, 0:D]
    be2 = p[ROW_BE2, 0:D]

    # ---- stacked Q|K|V projection: one matmul, biases folded via one-hot lanes ----
    qkv = jnp.dot(x_rep, wqkv_ref[...], preferred_element_type=jnp.float32)  # (NR, 3*DK)
    q_s = qkv[:, 0:DK]                     # (NR, DK)
    k_s = qkv[:, DK:2 * DK]                # (NR, DK)
    v_s = qkv[:, 2 * DK:3 * DK]            # (NR, DK)

    scale = 1.0 / math.sqrt(DK)

    # ---- ONE scores matmul over all (batch, head) blocks + ONE softmax ----
    scores = jax.lax.dot_general(
        q_s, k_s, (((1,), (1,)), ((), ())),
        preferred_element_type=jnp.float32) * scale + bias_ref[...]          # (NR, NR)

    smax = jnp.max(scores, axis=-1, keepdims=True)
    e = jnp.exp(scores - smax)
    probs = e / jnp.sum(e, axis=-1, keepdims=True)                           # exact softmax

    ctx = jnp.dot(probs, v_s, preferred_element_type=jnp.float32)            # (NR, DK)

    # ---- fold W_o over heads (sublane-aligned slices, no scratch round-trip) ----
    attn = jnp.dot(ctx[0:BS, :], wo_ref[0:DK, :],
                   preferred_element_type=jnp.float32)
    for h in range(1, NH):
        attn = attn + jnp.dot(ctx[h * BS:(h + 1) * BS, :],
                              wo_ref[h * DK:(h + 1) * DK, :],
                              preferred_element_type=jnp.float32)
    attn = attn + b_o                                                        # (BS, D)

    # ---- residual + LayerNorm 1 (dropout == identity in eval) ----
    h1 = x + attn
    mu1 = jnp.mean(h1, axis=-1, keepdims=True)
    var1 = jnp.mean((h1 - mu1) ** 2, axis=-1, keepdims=True)
    y1 = (h1 - mu1) * jax.lax.rsqrt(var1 + EPS) * g1 + be1

    # ---- feed-forward: Linear -> LeakyReLU(0.01) -> Linear ----
    ff = jnp.dot(y1, w1_ref[...], preferred_element_type=jnp.float32) + b_1
    ff = jnp.where(ff > 0, ff, 0.01 * ff)
    ff = jnp.dot(ff, w2_ref[...], preferred_element_type=jnp.float32) + b_2

    # ---- residual + LayerNorm 2 ----
    h2 = y1 + ff
    mu2 = jnp.mean(h2, axis=-1, keepdims=True)
    var2 = jnp.mean((h2 - mu2) ** 2, axis=-1, keepdims=True)
    o_ref[...] = (h2 - mu2) * jax.lax.rsqrt(var2 + EPS) * g2 + be2


def _full_spec(shape):
    # Whole-array block; no grid -> index_map takes no arguments.
    zeros = (0,) * len(shape)
    return pl.BlockSpec(shape, lambda: zeros)


def _pad_row(v, width=128):
    v = v.reshape(-1).astype(jnp.float32)
    return jnp.pad(v, (0, width - v.shape[0]))


@jax.jit
def encoder_layer(x, mask, params):
    (wq, bq, wk, bk, wv, bv, wo, bo,
     g1, be1, w1, b1, w2, b2, g2, be2) = params

    assert x.shape == (B, S, D), x.shape
    assert mask.shape == (B, 1, S, S), mask.shape

    x2d = x.reshape(BS, D).astype(jnp.float32)

    # ---- host-side packing / layout prep (free under jit, outside the kernel) ----
    # Block-diagonal replicated input + one-hot head-id lanes (folds QKV biases).
    eye_h = jnp.eye(NH, dtype=jnp.float32)
    x_blockdiag = jnp.kron(eye_h, x2d)                        # (NR, NH*D)
    head_onehot = jnp.repeat(eye_h, BS, axis=0)               # (NR, NH)
    x_rep = jnp.concatenate(
        [x_blockdiag, head_onehot, jnp.zeros((NR, CTR - NH * D - NH), jnp.float32)],
        axis=1)                                               # (NR, CTR)

    # Stacked QKV weight: rows h*D..h*D+D-1 carry [Wq_h | Wk_h | Wv_h],
    # row NH*D + h carries the per-head biases [bq_h | bk_h | bv_h].
    w_qkv_s = jnp.zeros((CTR, 3 * DK), jnp.float32)
    for h in range(NH):
        cs = slice(h * DK, (h + 1) * DK)
        rows = slice(h * D, (h + 1) * D)
        w_qkv_s = w_qkv_s.at[rows, 0:DK].set(wq[:, cs])
        w_qkv_s = w_qkv_s.at[rows, DK:2 * DK].set(wk[:, cs])
        w_qkv_s = w_qkv_s.at[rows, 2 * DK:3 * DK].set(wv[:, cs])
        w_qkv_s = w_qkv_s.at[NH * D + h, 0:DK].set(bq.reshape(-1)[cs])
        w_qkv_s = w_qkv_s.at[NH * D + h, DK:2 * DK].set(bk.reshape(-1)[cs])
        w_qkv_s = w_qkv_s.at[NH * D + h, 2 * DK:3 * DK].set(bv.reshape(-1)[cs])

    # Additive attention bias (NR, NR): mask bias on the (head, batch) block
    # diagonal, -1e9 everywhere else (kills cross-(batch,head) scores).
    mask_bias = jnp.where(mask[:, 0] == 0, jnp.float32(-1e9), jnp.float32(0.0))  # (B,S,S)
    blocks = jnp.tile(mask_bias, (NH, 1, 1))                                     # (NH*B,S,S)
    eye_blk = jnp.eye(NH * B, dtype=jnp.float32)
    full = jnp.einsum('nm,nqk->nqmk', eye_blk, blocks).reshape(NR, NR)
    ridx = jnp.arange(NR) // S
    same_block = ridx[:, None] == ridx[None, :]
    attn_bias = jnp.where(same_block, full, jnp.float32(-1e9))                   # (NR, NR)

    # Packed parameter rows, each lane-0 aligned.
    pvec2d = jnp.stack([_pad_row(bo), _pad_row(b1), _pad_row(b2),
                        _pad_row(g1), _pad_row(be1), _pad_row(g2), _pad_row(be2)],
                       axis=0)                                                   # (7, 128)

    out2d = pl.pallas_call(
        encoder_layer_kernel,
        out_shape=jax.ShapeDtypeStruct((BS, D), jnp.float32),
        in_specs=[
            _full_spec((NR, CTR)),        # block-diag replicated x (+ head one-hot)
            _full_spec((NR, NR)),         # additive attention bias (mask + block structure)
            _full_spec((CTR, 3 * DK)),    # stacked W_qkv (+ bias rows)
            _full_spec((D, D)),           # W_o
            _full_spec((D, F)),           # ffn W1
            _full_spec((F, D)),           # ffn W2
            _full_spec((7, 128)),         # packed biases + LayerNorm params
        ],
        out_specs=_full_spec((BS, D)),
    )(x_rep, attn_bias, w_qkv_s,
      wo.astype(jnp.float32), w1.astype(jnp.float32), w2.astype(jnp.float32),
      pvec2d)

    return out2d.reshape(B, S, D)


# ----------------------------- pure-JAX reference -----------------------------
def reference(x, mask, params):
    (wq, bq, wk, bk, wv, bv, wo, bo,
     g1, be1, w1, b1, w2, b2, g2, be2) = params

    def ln(h, g, be):
        mu = jnp.mean(h, -1, keepdims=True)
        var = jnp.mean((h - mu) ** 2, -1, keepdims=True)
        return (h - mu) / jnp.sqrt(var + EPS) * g + be

    q = (x @ wq + bq).reshape(B, S, NH, DK).transpose(0, 2, 1, 3)
    k = (x @ wk + bk).reshape(B, S, NH, DK).transpose(0, 2, 1, 3)
    v = (x @ wv + bv).reshape(B, S, NH, DK).transpose(0, 2, 1, 3)
    scores = jnp.einsum("bhqd,bhkd->bhqk", q, k) / math.sqrt(DK)
    scores = jnp.where(mask == 0, -1e9, scores)
    probs = jax.nn.softmax(scores, axis=-1)
    attn = jnp.einsum("bhqk,bhkd->bhqd", probs, v).transpose(0, 2, 1, 3).reshape(B, S, D)
    attn = attn @ wo + bo
    y1 = ln(x + attn, g1, be1)
    ff = y1 @ w1 + b1
    ff = jnp.where(ff > 0, ff, 0.01 * ff)
    ff = ff @ w2 + b2
    return ln(y1 + ff, g2, be2)


if __name__ == "__main__":
    key = jax.random.PRNGKey(0)
    keys = jax.random.split(key, 20)

    def lin(kw, n_in, n_out):
        # deterministic, PyTorch-Linear-like init (uniform +-1/sqrt(in))
        lim = 1.0 / math.sqrt(n_in)
        return jax.random.uniform(kw, (n_in, n_out), jnp.float32, -lim, lim)

    wq = lin(keys[0], D, D); bq = jax.random.normal(keys[1], (1, D)) * 0.02
    wk = lin(keys[2], D, D); bk = jax.random.normal(keys[3], (1, D)) * 0.02
    wv = lin(keys[4], D, D); bv = jax.random.normal(keys[5], (1, D)) * 0.02
    wo = lin(keys[6], D, D); bo = jax.random.normal(keys[7], (1, D)) * 0.02
    g1 = jnp.ones((1, D), jnp.float32) + 0.1 * jax.random.normal(keys[8], (1, D))
    be1 = 0.05 * jax.random.normal(keys[9], (1, D))
    w1 = lin(keys[10], D, F); b1 = jax.random.normal(keys[11], (1, F)) * 0.02
    w2 = lin(keys[12], F, D); b2 = jax.random.normal(keys[13], (1, D)) * 0.02
    g2 = jnp.ones((1, D), jnp.float32) + 0.1 * jax.random.normal(keys[14], (1, D))
    be2 = 0.05 * jax.random.normal(keys[15], (1, D))

    params = (wq, bq, wk, bk, wv, bv, wo, bo,
              g1, be1, w1, b1, w2, b2, g2, be2)

    x = jax.random.normal(keys[16], (B, S, D), jnp.float32)
    # mask: 1 = attend, 0 = masked; mask out last 2 key positions for batch 1
    mask = jnp.ones((B, 1, S, S), jnp.float32)
    mask = mask.at[1, :, :, S - 2:].set(0.0)

    out = encoder_layer(x, mask, params)
    jax.block_until_ready(out)

    ref = reference(x, mask, params)
    err = float(jnp.max(jnp.abs(out - ref)))
    assert jnp.allclose(out, ref, atol=1e-3, rtol=1e-3), err

    print("KERNEL_OK")
</pallas_src>

<mosaic_0001>
module attributes {stable_mosaic.version = 11 : i64} {
  func.func @encoder_layer_kernel(%arg0: memref<64x136xf32, #tpu.memory_space<vmem>>, %arg1: memref<64x64xf32, #tpu.memory_space<vmem>>, %arg2: memref<136x24xf32, #tpu.memory_space<vmem>>, %arg3: memref<32x32xf32, #tpu.memory_space<vmem>>, %arg4: memref<32x64xf32, #tpu.memory_space<vmem>>, %arg5: memref<64x32xf32, #tpu.memory_space<vmem>>, %arg6: memref<7x128xf32, #tpu.memory_space<vmem>>, %arg7: memref<16x32xf32, #tpu.memory_space<vmem>>) attributes {dimension_semantics = [], scalar_prefetch = 0 : i64, scratch_operands = 0 : i64, tpu.core_type = #tpu.core_type<tc>} {
    %c0 = arith.constant 0 : index
    %c0_0 = arith.constant 0 : index
    %0 = vector.load %arg0[%c0, %c0_0] : memref<64x136xf32, #tpu.memory_space<vmem>>, vector<64x136xf32>
    %1 = vector.extract_strided_slice %0 {offsets = [0, 0], sizes = [16, 32], strides = [1, 1]} : vector<64x136xf32> to vector<16x32xf32>
    %c0_1 = arith.constant 0 : index
    %c0_2 = arith.constant 0 : index
    %2 = vector.load %arg6[%c0_1, %c0_2] : memref<7x128xf32, #tpu.memory_space<vmem>>, vector<7x128xf32>
    %3 = vector.extract_strided_slice %2 {offsets = [0, 0], sizes = [1, 32], strides = [1, 1]} : vector<7x128xf32> to vector<1x32xf32>
    %4 = vector.shape_cast %3 : vector<1x32xf32> to vector<32xf32>
    %5 = vector.extract_strided_slice %2 {offsets = [1, 0], sizes = [1, 64], strides = [1, 1]} : vector<7x128xf32> to vector<1x64xf32>
    %6 = vector.shape_cast %5 : vector<1x64xf32> to vector<64xf32>
    %7 = vector.extract_strided_slice %2 {offsets = [2, 0], sizes = [1, 32], strides = [1, 1]} : vector<7x128xf32> to vector<1x32xf32>
    %8 = vector.shape_cast %7 : vector<1x32xf32> to vector<32xf32>
    %9 = vector.extract_strided_slice %2 {offsets = [3, 0], sizes = [1, 32], strides = [1, 1]} : vector<7x128xf32> to vector<1x32xf32>
    %10 = vector.shape_cast %9 : vector<1x32xf32> to vector<32xf32>
    %11 = vector.extract_strided_slice %2 {offsets = [4, 0], sizes = [1, 32], strides = [1, 1]} : vector<7x128xf32> to vector<1x32xf32>
    %12 = vector.shape_cast %11 : vector<1x32xf32> to vector<32xf32>
    %13 = vector.extract_strided_slice %2 {offsets = [5, 0], sizes = [1, 32], strides = [1, 1]} : vector<7x128xf32> to vector<1x32xf32>
    %14 = vector.shape_cast %13 : vector<1x32xf32> to vector<32xf32>
    %15 = vector.extract_strided_slice %2 {offsets = [6, 0], sizes = [1, 32], strides = [1, 1]} : vector<7x128xf32> to vector<1x32xf32>
    %16 = vector.shape_cast %15 : vector<1x32xf32> to vector<32xf32>
    %c0_3 = arith.constant 0 : index
    %c0_4 = arith.constant 0 : index
    %17 = vector.load %arg2[%c0_3, %c0_4] : memref<136x24xf32, #tpu.memory_space<vmem>>, vector<136x24xf32>
    %cst = arith.constant dense<0.000000e+00> : vector<64x24xf32>
    %18 = tpu.matmul %0, %17, %cst {dimension_numbers = #tpu.dot_dimension_numbers<[1], [0], [0], [1], [0, 0, 1, 1], [], []>} : vector<64x136xf32>, vector<136x24xf32>, vector<64x24xf32> -> vector<64x24xf32>
    %19 = vector.extract_strided_slice %18 {offsets = [0, 0], sizes = [64, 8], strides = [1, 1]} : vector<64x24xf32> to vector<64x8xf32>
    %20 = vector.extract_strided_slice %18 {offsets = [0, 8], sizes = [64, 8], strides = [1, 1]} : vector<64x24xf32> to vector<64x8xf32>
    %21 = vector.extract_strided_slice %18 {offsets = [0, 16], sizes = [64, 8], strides = [1, 1]} : vector<64x24xf32> to vector<64x8xf32>
    %cst_5 = arith.constant dense<0.000000e+00> : vector<64x64xf32>
    %22 = tpu.matmul %19, %20, %cst_5 {dimension_numbers = #tpu.dot_dimension_numbers<[1], [1], [0], [0], [0, 0, 1, 0], [], []>} : vector<64x8xf32>, vector<64x8xf32>, vector<64x64xf32> -> vector<64x64xf32>
    %cst_6 = arith.constant 0.353553385 : f32
    %23 = vector.broadcast %cst_6 : f32 to vector<64x64xf32>
    %24 = arith.mulf %22, %23 : vector<64x64xf32>
    %c0_7 = arith.constant 0 : index
    %c0_8 = arith.constant 0 : index
    %25 = vector.load %arg1[%c0_7, %c0_8] : memref<64x64xf32, #tpu.memory_space<vmem>>, vector<64x64xf32>
    %26 = arith.addf %24, %25 : vector<64x64xf32>
    %cst_9 = arith.constant dense<0xFF800000> : vector<64xf32>
    %27 = vector.multi_reduction <maximumf>, %26, %cst_9 [1] : vector<64x64xf32> to vector<64xf32>
    %28 = vector.shape_cast %27 : vector<64xf32> to vector<64x1xf32>
    %29 = vector.broadcast %28 : vector<64x1xf32> to vector<64x64xf32>
    %30 = arith.subf %26, %29 : vector<64x64xf32>
    %31 = math.exp %30 : vector<64x64xf32>
    %cst_10 = arith.constant dense<0.000000e+00> : vector<64xf32>
    %32 = vector.multi_reduction <add>, %31, %cst_10 [1] : vector<64x64xf32> to vector<64xf32>
    %33 = vector.shape_cast %32 : vector<64xf32> to vector<64x1xf32>
    %34 = vector.broadcast %33 : vector<64x1xf32> to vector<64x64xf32>
    %35 = arith.divf %31, %34 : vector<64x64xf32>
    %cst_11 = arith.constant dense<0.000000e+00> : vector<64x8xf32>
    %36 = tpu.matmul %35, %21, %cst_11 {dimension_numbers = #tpu.dot_dimension_numbers<[1], [0], [0], [1], [0, 0, 1, 1], [], []>} : vector<64x64xf32>, vector<64x8xf32>, vector<64x8xf32> -> vector<64x8xf32>
    %37 = vector.extract_strided_slice %36 {offsets = [0, 0], sizes = [16, 8], strides = [1, 1]} : vector<64x8xf32> to vector<16x8xf32>
    %c0_12 = arith.constant 0 : index
    %c0_13 = arith.constant 0 : index
    %38 = vector.load %arg3[%c0_12, %c0_13] : memref<32x32xf32, #tpu.memory_space<vmem>>, vector<8x32xf32>
    %cst_14 = arith.constant dense<0.000000e+00> : vector<16x32xf32>
    %39 = tpu.matmul %37, %38, %cst_14 {dimension_numbers = #tpu.dot_dimension_numbers<[1], [0], [0], [1], [0, 0, 1, 1], [], []>} : vector<16x8xf32>, vector<8x32xf32>, vector<16x32xf32> -> vector<16x32xf32>
    %40 = vector.extract_strided_slice %36 {offsets = [16, 0], sizes = [16, 8], strides = [1, 1]} : vector<64x8xf32> to vector<16x8xf32>
    %c8 = arith.constant 8 : index
    %c0_15 = arith.constant 0 : index
    %41 = vector.load %arg3[%c8, %c0_15] : memref<32x32xf32, #tpu.memory_space<vmem>>, vector<8x32xf32>
    %cst_16 = arith.constant dense<0.000000e+00> : vector<16x32xf32>
    %42 = tpu.matmul %40, %41, %cst_16 {dimension_numbers = #tpu.dot_dimension_numbers<[1], [0], [0], [1], [0, 0, 1, 1], [], []>} : vector<16x8xf32>, vector<8x32xf32>, vector<16x32xf32> -> vector<16x32xf32>
    %43 = arith.addf %39, %42 : vector<16x32xf32>
    %44 = vector.extract_strided_slice %36 {offsets = [32, 0], sizes = [16, 8], strides = [1, 1]} : vector<64x8xf32> to vector<16x8xf32>
    %c16 = arith.constant 16 : index
    %c0_17 = arith.constant 0 : index
    %45 = vector.load %arg3[%c16, %c0_17] : memref<32x32xf32, #tpu.memory_space<vmem>>, vector<8x32xf32>
    %cst_18 = arith.constant dense<0.000000e+00> : vector<16x32xf32>
    %46 = tpu.matmul %44, %45, %cst_18 {dimension_numbers = #tpu.dot_dimension_numbers<[1], [0], [0], [1], [0, 0, 1, 1], [], []>} : vector<16x8xf32>, vector<8x32xf32>, vector<16x32xf32> -> vector<16x32xf32>
    %47 = arith.addf %43, %46 : vector<16x32xf32>
    %48 = vector.extract_strided_slice %36 {offsets = [48, 0], sizes = [16, 8], strides = [1, 1]} : vector<64x8xf32> to vector<16x8xf32>
    %c24 = arith.constant 24 : index
    %c0_19 = arith.constant 0 : index
    %49 = vector.load %arg3[%c24, %c0_19] : memref<32x32xf32, #tpu.memory_space<vmem>>, vector<8x32xf32>
    %cst_20 = arith.constant dense<0.000000e+00> : vector<16x32xf32>
    %50 = tpu.matmul %48, %49, %cst_20 {dimension_numbers = #tpu.dot_dimension_numbers<[1], [0], [0], [1], [0, 0, 1, 1], [], []>} : vector<16x8xf32>, vector<8x32xf32>, vector<16x32xf32> -> vector<16x32xf32>
    %51 = arith.addf %47, %50 : vector<16x32xf32>
    %52 = vector.shape_cast %4 : vector<32xf32> to vector<1x32xf32>
    %53 = vector.broadcast %52 : vector<1x32xf32> to vector<16x32xf32>
    %54 = arith.addf %51, %53 : vector<16x32xf32>
    %55 = arith.addf %1, %54 : vector<16x32xf32>
    %cst_21 = arith.constant dense<0.000000e+00> : vector<16xf32>
    %56 = vector.multi_reduction <add>, %55, %cst_21 [1] : vector<16x32xf32> to vector<16xf32>
    %57 = vector.shape_cast %56 : vector<16xf32> to vector<16x1xf32>
    %cst_22 = arith.constant 3.200000e+01 : f32
    %58 = vector.broadcast %cst_22 : f32 to vector<16x1xf32>
    %59 = arith.divf %57, %58 : vector<16x1xf32>
    %60 = vector.broadcast %59 : vector<16x1xf32> to vector<16x32xf32>
    %61 = arith.subf %55, %60 : vector<16x32xf32>
    %62 = arith.mulf %61, %61 : vector<16x32xf32>
    %cst_23 = arith.constant dense<0.000000e+00> : vector<16xf32>
    %63 = vector.multi_reduction <add>, %62, %cst_23 [1] : vector<16x32xf32> to vector<16xf32>
    %64 = vector.shape_cast %63 : vector<16xf32> to vector<16x1xf32>
    %cst_24 = arith.constant 3.200000e+01 : f32
    %65 = vector.broadcast %cst_24 : f32 to vector<16x1xf32>
    %66 = arith.divf %64, %65 : vector<16x1xf32>
    %67 = vector.broadcast %59 : vector<16x1xf32> to vector<16x32xf32>
    %68 = arith.subf %55, %67 : vector<16x32xf32>
    %cst_25 = arith.constant 9.99999974E-6 : f32
    %69 = vector.broadcast %cst_25 : f32 to vector<16x1xf32>
    %70 = arith.addf %66, %69 : vector<16x1xf32>
    %71 = math.rsqrt %70 : vector<16x1xf32>
    %72 = vector.broadcast %71 : vector<16x1xf32> to vector<16x32xf32>
    %73 = arith.mulf %68, %72 : vector<16x32xf32>
    %74 = vector.shape_cast %10 : vector<32xf32> to vector<1x32xf32>
    %75 = vector.broadcast %74 : vector<1x32xf32> to vector<16x32xf32>
    %76 = arith.mulf %73, %75 : vector<16x32xf32>
    %77 = vector.shape_cast %12 : vector<32xf32> to vector<1x32xf32>
    %78 = vector.broadcast %77 : vector<1x32xf32> to vector<16x32xf32>
    %79 = arith.addf %76, %78 : vector<16x32xf32>
    %c0_26 = arith.constant 0 : index
    %c0_27 = arith.constant 0 : index
    %80 = vector.load %arg4[%c0_26, %c0_27] : memref<32x64xf32, #tpu.memory_space<vmem>>, vector<32x64xf32>
    %cst_28 = arith.constant dense<0.000000e+00> : vector<16x64xf32>
    %81 = tpu.matmul %79, %80, %cst_28 {dimension_numbers = #tpu.dot_dimension_numbers<[1], [0], [0], [1], [0, 0, 1, 1], [], []>} : vector<16x32xf32>, vector<32x64xf32>, vector<16x64xf32> -> vector<16x64xf32>
    %82 = vector.shape_cast %6 : vector<64xf32> to vector<1x64xf32>
    %83 = vector.broadcast %82 : vector<1x64xf32> to vector<16x64xf32>
    %84 = arith.addf %81, %83 : vector<16x64xf32>
    %cst_29 = arith.constant 0.000000e+00 : f32
    %85 = vector.broadcast %cst_29 : f32 to vector<16x64xf32>
    %86 = arith.cmpf ogt, %84, %85 : vector<16x64xf32>
    %cst_30 = arith.constant 0.00999999977 : f32
    %87 = vector.broadcast %cst_30 : f32 to vector<16x64xf32>
    %88 = arith.mulf %87, %84 : vector<16x64xf32>
    %89 = arith.select %86, %84, %88 : vector<16x64xi1>, vector<16x64xf32>
    %c0_31 = arith.constant 0 : index
    %c0_32 = arith.constant 0 : index
    %90 = vector.load %arg5[%c0_31, %c0_32] : memref<64x32xf32, #tpu.memory_space<vmem>>, vector<64x32xf32>
    %cst_33 = arith.constant dense<0.000000e+00> : vector<16x32xf32>
    %91 = tpu.matmul %89, %90, %cst_33 {dimension_numbers = #tpu.dot_dimension_numbers<[1], [0], [0], [1], [0, 0, 1, 1], [], []>} : vector<16x64xf32>, vector<64x32xf32>, vector<16x32xf32> -> vector<16x32xf32>
    %92 = vector.shape_cast %8 : vector<32xf32> to vector<1x32xf32>
    %93 = vector.broadcast %92 : vector<1x32xf32> to vector<16x32xf32>
    %94 = arith.addf %91, %93 : vector<16x32xf32>
    %95 = arith.addf %79, %94 : vector<16x32xf32>
    %cst_34 = arith.constant dense<0.000000e+00> : vector<16xf32>
    %96 = vector.multi_reduction <add>, %95, %cst_34 [1] : vector<16x32xf32> to vector<16xf32>
    %97 = vector.shape_cast %96 : vector<16xf32> to vector<16x1xf32>
    %cst_35 = arith.constant 3.200000e+01 : f32
    %98 = vector.broadcast %cst_35 : f32 to vector<16x1xf32>
    %99 = arith.divf %97, %98 : vector<16x1xf32>
    %100 = vector.broadcast %99 : vector<16x1xf32> to vector<16x32xf32>
    %101 = arith.subf %95, %100 : vector<16x32xf32>
    %102 = arith.mulf %101, %101 : vector<16x32xf32>
    %cst_36 = arith.constant dense<0.000000e+00> : vector<16xf32>
    %103 = vector.multi_reduction <add>, %102, %cst_36 [1] : vector<16x32xf32> to vector<16xf32>
    %104 = vector.shape_cast %103 : vector<16xf32> to vector<16x1xf32>
    %cst_37 = arith.constant 3.200000e+01 : f32
    %105 = vector.broadcast %cst_37 : f32 to vector<16x1xf32>
    %106 = arith.divf %104, %105 : vector<16x1xf32>
    %107 = vector.broadcast %99 : vector<16x1xf32> to vector<16x32xf32>
    %108 = arith.subf %95, %107 : vector<16x32xf32>
    %cst_38 = arith.constant 9.99999974E-6 : f32
    %109 = vector.broadcast %cst_38 : f32 to vector<16x1xf32>
    %110 = arith.addf %106, %109 : vector<16x1xf32>
    %111 = math.rsqrt %110 : vector<16x1xf32>
    %112 = vector.broadcast %111 : vector<16x1xf32> to vector<16x32xf32>
    %113 = arith.mulf %108, %112 : vector<16x32xf32>
    %114 = vector.shape_cast %14 : vector<32xf32> to vector<1x32xf32>
    %115 = vector.broadcast %114 : vector<1x32xf32> to vector<16x32xf32>
    %116 = arith.mulf %113, %115 : vector<16x32xf32>
    %117 = vector.shape_cast %16 : vector<32xf32> to vector<1x32xf32>
    %118 = vector.broadcast %117 : vector<1x32xf32> to vector<16x32xf32>
    %119 = arith.addf %116, %118 : vector<16x32xf32>
    %c0_39 = arith.constant 0 : index
    %c0_40 = arith.constant 0 : index
    %120 = vector.load %arg7[%c0_39, %c0_40] : memref<16x32xf32, #tpu.memory_space<vmem>>, vector<16x32xf32>
    tpu.vector_store %arg7[%c0_39, %c0_40], %119 {strides = array<i32>} : memref<16x32xf32, #tpu.memory_space<vmem>>, vector<16x32xf32>,
    return
  }
}

</mosaic_0001>

<bundles_post_ra>
// kernel: encoder_layer.1
= control target key start
LH: loop header
LB: loop body
LE: loop exit
PB: predicated region body
PF: predicated region fallthrough
CT: control target
= control target key end

     0   :  { %v1522_v1 = vmov 0.0   ;;  %vm61_vm0 = vcmask 64512   ;;  %s1925_s0 = inlined_call_operand.vmem [shape: f32[64,136], index: 0, kind: input, shape index: {}]   ;;  %s1926_s1 = inlined_call_operand.vmem [shape: f32[64,64], index: 1, kind: input, shape index: {}]   ;;  %s1927_s2 = inlined_call_operand.vmem [shape: f32[136,24], index: 2, kind: input, shape index: {}]   ;;  %s1928_s3 = inlined_call_operand.vmem [shape: f32[32,32], index: 3, kind: input, shape index: {}]   ;;  %s1929_s4 = inlined_call_operand.vmem [shape: f32[32,64], index: 4, kind: input, shape index: {}]   ;;  %s1930_s5 = inlined_call_operand.vmem [shape: f32[64,32], index: 5, kind: input, shape index: {}]   ;;  %s1931_s6 = inlined_call_operand.vmem [shape: f32[7,128], index: 6, kind: input, shape index: {}]   ;;  %s1932_s7 = inlined_call_operand.hbm [shape: f32[16,32], index: 7, kind: output, shape index: {}]  }
   0x1   :  { %v59_v0 = vld [vmem:[%s1927_s2 + $0x78] sm:$0xff]  ;;  %86 = vmatprep.subr.mxu0 %v1522_v1  ;;  %v58_v2 = vld [vmem:[%s1927_s2 + $0x70] sm:$0xff]  ;;  %v57_v3 = vld [vmem:[%s1927_s2 + $0x68] sm:$0xff] }
   0x2   :  { %87 = vmatpush1.msra.mxu0 %v59_v0  ;;  %v56_v4 = vld [vmem:[%s1927_s2 + $0x60] sm:$0xff]  ;;  %v28_v5 = vld [vmem:[%s1925_s0 + $0x8] sm:$0xff]  ;;  %v55_v6 = vld [vmem:[%s1927_s2 + $0x58] sm:$0xff] }
   0x3   :  { %88 = vmatprep.subr.mxu0 %v1522_v1  ;;  %1244 = vmatprep.mubr.msk.f32.mxu0 %vm61_vm0, %v28_v5  ;;  %v54_v7 = vld [vmem:[%s1927_s2 + $0x50] sm:$0xff]  ;;  %v53_v8 = vld [vmem:[%s1927_s2 + $0x48] sm:$0xff] }
   0x4   :  { %89 = vmatpush1.msra.mxu0 %v58_v2 }
   0x5   :  { %90 = vmatprep.subr.mxu0 %v1522_v1 }
   0x6   :  { %91 = vmatpush1.msra.mxu0 %v57_v3 }
   0x7   :  { %92 = vmatprep.subr.mxu0 %v1522_v1 }
   0x8   :  { %93 = vmatpush1.msra.mxu0 %v56_v4 }
   0x9   :  { %94 = vmatprep.subr.mxu0 %v1522_v1 }
   0xa   :  { %95 = vmatpush1.msra.mxu0 %v55_v6 }
   0xb   :  { %96 = vmatprep.subr.mxu0 %v1522_v1 }
   0xc   :  { %12 = vsyncpa [#allocation3], 0  ;;  %97 = vmatpush1.msra.mxu0 %v54_v7  ;;  %v52_v9 = vld [vmem:[%s1927_s2 + $0x40] sm:$0xff]  ;;  %v51_v10 = vld [vmem:[%s1927_s2 + $0x38] sm:$0xff]  ;;  %vm376_vm1 = vcmask 523264   ;;  %s1524_s8 = smov 112  }
   0xd   :  { %98 = vmatprep.subr.mxu0 %v1522_v1  ;;  %v50_v11 = vld [vmem:[%s1927_s2 + $0x30] sm:$0xff]  ;;  %v49_v12 = vld [vmem:[%s1927_s2 + $0x28] sm:$0xff]  ;;  %v48_v13 = vld [vmem:[%s1927_s2 + $0x20] sm:$0xff]  ;;  %vm958_vm2 = vcmask 261120  }
   0xe   :  { %99 = vmatpush1.msra.mxu0 %v53_v8  ;;  %v47_v14 = vld [vmem:[%s1927_s2 + $0x18] sm:$0xff]  ;;  %v46_v15 = vld [vmem:[%s1927_s2 + $0x10] sm:$0xff]  ;;  %v45_v16 = vld [vmem:[%s1927_s2 + $0x8] sm:$0xff] }
   0xf   :  { %100 = vmatprep.subr.mxu0 %v1522_v1  ;;  %v44_v17 = vld [vmem:[%s1927_s2] sm:$0xff]  ;;  %v30_v20 = vld [vmem:[%s1925_s0 + $0x18] sm:$0xff]  ;;  %v1636_v21 = vld [vmem:[%s1925_s0 + $0x10] sm:$0xff] }
  0x10   :  { %101 = vmatpush1.msra.mxu0 %v52_v9  ;;  %v60_v18 = vld [vmem:[%s1927_s2 + $0x80] sm:$0xff]  ;;  %v32_v22 = vld [vmem:[%s1925_s0 + $0x28] sm:$0xff]  ;;  %v34_v24 = vld [vmem:[%s1925_s0 + $0x38] sm:$0xff] }
  0x11   :  { %102 = vmatprep.subr.mxu0 %v1522_v1  ;;  %v1626_v19 = vld [vmem:[%s1925_s0] sm:$0xff]  ;;  %v33_v25 = vld [vmem:[%s1925_s0 + $0x30] sm:$0xff]  ;;  %v36_v26 = vld [vmem:[%s1925_s0 + $0x48] sm:$0xff] }
  0x12   :  { %103 = vmatpush1.msra.mxu0 %v51_v10  ;;  %v31_v23 = vld [vmem:[%s1925_s0 + $0x20] sm:$0xff]  ;;  %v38_v28 = vld [vmem:[%s1925_s0 + $0x58] sm:$0xff]  ;;  %v37_v29 = vld [vmem:[%s1925_s0 + $0x50] sm:$0xff] }
  0x13   :  { %104 = vmatprep.subr.mxu0 %v1522_v1  ;;  %v35_v27 = vld [vmem:[%s1925_s0 + $0x40] sm:$0xff]  ;;  %v40_v30 = vld [vmem:[%s1925_s0 + $0x68] sm:$0xff]  ;;  %v42_v32 = vld [vmem:[%s1925_s0 + $0x78] sm:$0xff] }
  0x14   :  { %105 = vmatpush1.msra.mxu0 %v50_v11  ;;  %v39_v31 = vld [vmem:[%s1925_s0 + $0x60] sm:$0xff]  ;;  %v41_v33 = vld [vmem:[%s1925_s0 + $0x70] sm:$0xff]  ;;  %s1523_s0 = smov 120   ;;  %v361_v59 = vld [vmem:[%s1926_s1 + $0x8] sm:$0xff] }
  0x15   :  { %106 = vmatprep.subr.mxu0 %v1522_v1  ;;  %v360_v62 = vld [vmem:[%s1926_s1] sm:$0xff]  ;;  %v362_v5 = vld [vmem:[%s1926_s1 + $0x10] sm:$0xff]  ;;  %v363_v10 = vld [vmem:[%s1926_s1 + $0x18] sm:$0xff] }
  0x16   :  { %107 = vmatpush1.msra.mxu0 %v49_v12 }
  0x17   :  { %108 = vmatprep.subr.mxu0 %v1522_v1 }
  0x18   :  { %109 = vmatpush1.msra.mxu0 %v48_v13 }
  0x19   :  { %110 = vmatprep.subr.mxu0 %v1522_v1 }
  0x1a   :  { %111 = vmatpush1.msra.mxu0 %v47_v14 }
  0x1b   :  { %112 = vmatprep.subr.mxu0 %v1522_v1 }
  0x1c   :  { %113 = vmatpush1.msra.mxu0 %v46_v15 }
  0x1d   :  { %114 = vmatprep.subr.mxu0 %v1522_v1 }
  0x1e   :  { %115 = vmatpush1.msra.mxu0 %v45_v16 }
  0x1f   :  { %116 = vmatprep.subr.mxu0 %v1522_v1 }
  0x20   :  { %117 = vmatpush1.msra.mxu0 %v44_v17  ;;  %v365_v17 = vld [vmem:[%s1926_s1 + $0x28] sm:$0xff] }
  0x21   :  { %148 = vmatprep.subr.mxu0 %v1522_v1 }
  0x22   :  { %149 = vmatpush2.msra.mxu0 %v60_v18 }
  0x23   :  { %151 = vmatmul.mubr.f32.vlgmr.msra.gmra.mxu0 %v1626_v19 }
  0x24   :  { %1245 = vmatprep.mubr.msk.f32.mxu0 %vm61_vm0, %v30_v20 }
  0x27   :  { %156 = vmatmul.mubr.f32.gmra.mxu0 %v1636_v21 }
  0x28   :  { %1246 = vmatprep.mubr.msk.f32.mxu0 %vm61_vm0, %v32_v22 }
  0x2b   :  { %161 = vmatmul.mubr.f32.gmra.mxu0 %v31_v23  ;;  %v367_v23 = vld [vmem:[%s1926_s1 + $0x38] sm:$0xff] }
  0x2c   :  { %1247 = vmatprep.mubr.msk.f32.mxu0 %vm61_vm0, %v34_v24 }
  0x2f   :  { %166 = vmatmul.mubr.f32.gmra.mxu0 %v33_v25 }
  0x30   :  { %1248 = vmatprep.mubr.msk.f32.mxu0 %vm61_vm0, %v36_v26 }
  0x33   :  { %171 = vmatmul.mubr.f32.gmra.mxu0 %v35_v27 }
  0x34   :  { %1249 = vmatprep.mubr.msk.f32.mxu0 %vm61_vm0, %v38_v28  ;;  %v364_v28 = vld [vmem:[%s1926_s1 + $0x20] sm:$0xff] }
  0x37   :  { %176 = vmatmul.mubr.f32.gmra.mxu0 %v37_v29 }
  0x38   :  { %1250 = vmatprep.mubr.msk.f32.mxu0 %vm61_vm0, %v40_v30 }
  0x3b   :  { %181 = vmatmul.mubr.f32.gmra.mxu0 %v39_v31 }
  0x3c   :  { %1251 = vmatprep.mubr.msk.f32.mxu0 %vm61_vm0, %v42_v32 }
  0x3f   :  { %186 = vmatmul.mubr.f32.gmra.mxu0 %v41_v33  ;;  %v366_v33 = vld [vmem:[%s1926_s1 + $0x30] sm:$0xff] }
  0xe3   :  { %v1681_v34 = vpop.f32.mrf.mxu0 }
  0xe4   :  { %1364 = vmatprep.mubr.msk.f32.mxu1 %vm61_vm0, %v1681_v34 }
  0xe5   :  { %v154_v35 = vpop.f32.mrf.mxu0 }
  0xe7   :  { %v1685_v36 = vpop.f32.mrf.mxu0 }
  0xe9   :  { %v159_v37 = vpop.f32.mrf.mxu0 }
  0xeb   :  { %v1687_v38 = vpop.f32.mrf.mxu0 }
  0xed   :  { %v164_v39 = vpop.f32.mrf.mxu0 }
  0xef   :  { %v1689_v40 = vpop.f32.mrf.mxu0 }
  0xf1   :  { %v169_v41 = vpop.f32.mrf.mxu0 }
  0xf3   :  { %v1691_v42 = vpop.f32.mrf.mxu0 }
  0xf5   :  { %v174_v43 = vpop.f32.mrf.mxu0 }
  0xf7   :  { %v1693_v44 = vpop.f32.mrf.mxu0 }
  0xf8   :  { %209 = vrot.lane.b32.xlu1 %v1693_v44, %s1523_s0 }
  0xf9   :  { %v179_v45 = vpop.f32.mrf.mxu0 }
  0xfb   :  { %v1696_v46 = vpop.f32.mrf.mxu0 }
  0xfc   :  { %207 = vrot.lane.b32.xlu1 %v1691_v42, %s1523_s0 }
  0xfd   :  { %v184_v47 = vpop.f32.mrf.mxu0 }
  0xff   :  { %v1699_v48 = vpop.f32.mrf.mxu0 }
 0x100   :  { %203 = vrot.lane.b32.xlu1 %v1687_v38, %s1523_s0  ;;  %213 = vrot.lane.b32.xlu0 %v1699_v48, %s1523_s0 }
 0x101   :  { %v189_v49 = vpop.f32.mrf.mxu0 }
 0x104   :  { %199 = vrot.lane.b32.xlu1 %v1681_v34, %s1523_s0  ;;  %211 = vrot.lane.b32.xlu0 %v1696_v46, %s1523_s0 }
 0x108   :  { %205 = vrot.lane.b32.xlu0 %v1689_v40, %s1523_s0 }
 0x10c   :  { %201 = vrot.lane.b32.xlu0 %v1685_v36, %s1523_s0 }
 0x16a   :  { %v210_v51 = vpop.permute.xlu1 %209 }
 0x16e   :  { %v208_v53 = vpop.permute.xlu1 %207 }
 0x172   :  { %v214_v50 = vpop.permute.xlu0 %213  ;;  %v204_v55 = vpop.permute.xlu1 %203 }
 0x173   :  { %1348 = vmatprep.subr.msk.mxu1 %vm61_vm0, %v214_v50 }
 0x174   :  { %1349 = vmatpush3.xpose.msk.msra.mxu1 %vm61_vm0, %v214_v50 }
 0x176   :  { %v212_v52 = vpop.permute.xlu0 %211  ;;  %v200_v57 = vpop.permute.xlu1 %199 }
 0x177   :  { %1350 = vmatprep.subr.msk.mxu1 %vm61_vm0, %v212_v52 }
 0x178   :  { %1351 = vmatpush3.xpose.msk.msra.mxu1 %vm61_vm0, %v212_v52 }
 0x179   :  { %1352 = vmatprep.subr.msk.mxu1 %vm61_vm0, %v210_v51 }
 0x17a   :  { %v206_v54 = vpop.permute.xlu0 %205 }
 0x17c   :  { %1353 = vmatpush3.xpose.msk.msra.mxu1 %vm61_vm0, %v210_v51 }
 0x17d   :  { %1354 = vmatprep.subr.msk.mxu1 %vm61_vm0, %v208_v53 }
 0x17e   :  { %v202_v56 = vpop.permute.xlu0 %201 }
 0x180   :  { %1355 = vmatpush3.xpose.msk.msra.mxu1 %vm61_vm0, %v208_v53 }
 0x181   :  { %1356 = vmatprep.subr.msk.mxu1 %vm61_vm0, %v206_v54 }
 0x184   :  { %1357 = vmatpush3.xpose.msk.msra.mxu1 %vm61_vm0, %v206_v54 }
 0x185   :  { %1358 = vmatprep.subr.msk.mxu1 %vm61_vm0, %v204_v55 }
 0x188   :  { %1359 = vmatpush3.xpose.msk.msra.mxu1 %vm61_vm0, %v204_v55 }
 0x189   :  { %1360 = vmatprep.subr.msk.mxu1 %vm61_vm0, %v202_v56 }
 0x18c   :  { %1361 = vmatpush3.xpose.msk.msra.mxu1 %vm61_vm0, %v202_v56 }
 0x18d   :  { %1362 = vmatprep.subr.msk.mxu1 %vm61_vm0, %v200_v57 }
 0x190   :  { %1363 = vmatpush3.xpose.msk.msra.mxu1 %vm61_vm0, %v200_v57 }
 0x193   :  { %1365 = vmatmul.mubr.msk.f32.vlgmr.msra.gmra.mxu1 %vm61_vm0, %v1685_v36 }
 0x194   :  { %1367 = vmatprep.mubr.msk.f32.mxu1 %vm61_vm0, %v1687_v38 }
 0x197   :  { %1368 = vmatmul.mubr.msk.f32.gmra.mxu1 %vm61_vm0, %v1689_v40 }
 0x198   :  { %1370 = vmatprep.mubr.msk.f32.mxu1 %vm61_vm0, %v1691_v42 }
 0x19b   :  { %1371 = vmatmul.mubr.msk.f32.gmra.mxu1 %vm61_vm0, %v1693_v44 }
 0x19c   :  { %1373 = vmatprep.mubr.msk.f32.mxu1 %vm61_vm0, %v1696_v46 }
 0x19f   :  { %1374 = vmatmul.mubr.msk.f32.gmra.mxu1 %vm61_vm0, %v1699_v48 }
 0x253   :  { %v1366_v58 = vpop.f32.mrf.mxu1 }
 0x254   :  { %v353_v60 = vmul.f32 0.35355338, %v1366_v58 }
 0x255   :  { %v313_v61 = vpop.f32.mrf.mxu1 }
 0x256   :  { %v352_v63 = vmul.f32 0.35355338, %v313_v61  ;;  %v369_v0 = vadd.f32 %v361_v59, %v353_v60 }
 0x257   :  { %v1369_v1 = vpop.f32.mrf.mxu1 }
 0x258   :  { %v380_v2 = vsel %vm376_vm1, %v369_v0, -inf  ;;  %v368_v3 = vadd.f32 %v360_v62, %v352_v63  ;;  %v355_v6 = vmul.f32 0.35355338, %v1369_v1 }
 0x259   :  { %381 = vmax.xlane.f32.xlu1 %v380_v2  ;;  %v323_v4 = vpop.f32.mrf.mxu1 }
 0x25a   :  { %v354_v7 = vmul.f32 0.35355338, %v323_v4  ;;  %v377_v8 = vsel %vm376_vm1, %v368_v3, -inf  ;;  %v371_v15 = vadd.f32 %v363_v10, %v355_v6 }
 0x25b   :  { %378 = vmax.xlane.f32.xlu0 %v377_v8  ;;  %v1372_v9 = vpop.f32.mrf.mxu1 }
 0x25c   :  { %v370_v11 = vadd.f32 %v362_v5, %v354_v7  ;;  %v357_v13 = vmul.f32 0.35355338, %v1372_v9  ;;  %v386_v20 = vsel %vm376_vm1, %v371_v15, -inf }
 0x25d   :  { %v333_v12 = vpop.f32.mrf.mxu1 }
 0x25e   :  { %v383_v14 = vsel %vm376_vm1, %v370_v11, -inf  ;;  %v373_v22 = vadd.f32 %v365_v17, %v357_v13  ;;  %v356_v27 = vmul.f32 0.35355338, %v333_v12 }
 0x25f   :  { %384 = vmax.xlane.f32.xlu0 %v383_v14  ;;  %v1375_v16 = vpop.f32.mrf.mxu1 }
 0x260   :  { %v359_v18 = vmul.f32 0.35355338, %v1375_v16  ;;  %v392_v24 = vsel %vm376_vm1, %v373_v22, -inf  ;;  %v1768_v29 = vadd.f32 %v364_v28, %v356_v27 }
 0x261   :  { %v343_v31 = vpop.f32.mrf.mxu1 }
 0x262   :  { %v375_v25 = vadd.f32 %v367_v23, %v359_v18  ;;  %v389_v30 = vsel %vm376_vm1, %v1768_v29, -inf  ;;  %v358_v32 = vmul.f32 0.35355338, %v343_v31 }
 0x263   :  { %387 = vmax.xlane.f32.xlu0 %v386_v20 }
 0x264   :  { %v398_v26 = vsel %vm376_vm1, %v375_v25, -inf  ;;  %v1777_v35 = vadd.f32 %v366_v33, %v358_v32 }
 0x266   :  { %v395_v37 = vsel %vm376_vm1, %v1777_v35, -inf }
 0x267   :  { %393 = vmax.xlane.f32.xlu0 %v392_v24 }
 0x26a   :  { %479 = vrot.lane.b32.xlu1 %v1699_v48, %s1524_s8 }
 0x26b   :  { %399 = vmax.xlane.f32.xlu0 %v398_v26 }
 0x281   :  { %477 = vrot.lane.b32.xlu0 %v1696_v46, %s1524_s8 }
 0x28e   :  { %390 = vmax.xlane.f32.xlu1 %v389_v30 }
 0x29f   :  { %475 = vrot.lane.b32.xlu1 %v1693_v44, %s1524_s8 }
 0x2c3   :  { %396 = vmax.xlane.f32.xlu1 %v395_v37  ;;  %v619_v37 = vld [vmem:[%s1928_s3 + $0x8] sm:$0xff] }
 0x2d4   :  { %473 = vrot.lane.b32.xlu1 %v1691_v42, %s1524_s8 }
 0x2d8   :  { %471 = vrot.lane.b32.xlu1 %v1689_v40, %s1524_s8 }
 0x2dc   :  { %469 = vrot.lane.b32.xlu1 %v1687_v38, %s1524_s8 }
 0x2e2   :  { %v382_v39 = vpop.xlane.xlu1 %381 }
 0x2e3   :  { %v402_v41 = vsub.f32 %v369_v0, %v382_v39 }
 0x2e4   :  { %v379_v43 = vpop.xlane.xlu0 %378 }
 0x2e5   :  { %v411_v44 = vmul.f32 1.442695, %v402_v41  ;;  %v401_v46 = vsub.f32 %v368_v3, %v379_v43 }
 0x2e6   :  { %v480_v45 = vpop.permute.xlu1 %479 }
 0x2e7   :  { %1460 = vpow2.f32 %v411_v44  ;;  %1376 = vmatprep.subr.mxu1 %v480_v45  ;;  %v409_v48 = vmul.f32 1.442695, %v401_v46 }
 0x2e8   :  { %1377 = vmatpush3.msra.mxu1 %v480_v45  ;;  %v385_v47 = vpop.xlane.xlu0 %384 }
 0x2e9   :  { %v403_v49 = vsub.f32 %v370_v11, %v385_v47  ;;  %1462 = vpow2.f32 %v409_v48 }
 0x2eb   :  { %v413_v51 = vmul.f32 1.442695, %v403_v49 }
 0x2ec   :  { %v388_v50 = vpop.xlane.xlu0 %387 }
 0x2ed   :  { %v404_v42 = vsub.f32 %v371_v15, %v388_v50 }
 0x2ef   :  { %v415_v40 = vmul.f32 1.442695, %v404_v42 }
 0x2f0   :  { %v394_v52 = vpop.xlane.xlu0 %393 }
 0x2f1   :  { %1464 = vpow2.f32 %v415_v40  ;;  %v406_v38 = vsub.f32 %v373_v22, %v394_v52  ;;  %v618_v40 = vld [vmem:[%s1928_s3] sm:$0xff] }
 0x2f2   :  { %1466 = vpow2.f32 %v413_v51 }
 0x2f3   :  { %v419_v53 = vmul.f32 1.442695, %v406_v38 }
 0x2f4   :  { %v1787_v54 = vpop.eup %1460  ;;  %v400_v55 = vpop.xlane.xlu0 %399 }
 0x2f5   :  { %1468 = vpow2.f32 %v419_v53  ;;  %v408_v56 = vsub.f32 %v375_v25, %v400_v55  ;;  %v428_v57 = vsel %vm376_vm1, %v1787_v54, 0.0  ;;  %v782_v55 = vld [vmem:[%s1928_s3 + $0x10] sm:$0xff] }
 0x2f6   :  { %429 = vadd.xlane.f32.xlu0 %v428_v57  ;;  %v1463_v60 = vpop.eup %1462 }
 0x2f7   :  { %v423_v58 = vmul.f32 1.442695, %v408_v56  ;;  %v425_v63 = vsel %vm376_vm1, %v1463_v60, 0.0 }
 0x2f8   :  { %v478_v59 = vpop.permute.xlu0 %477 }
 0x2f9   :  { %1470 = vpow2.f32 %v423_v58  ;;  %1378 = vmatprep.subr.mxu1 %v478_v59 }
 0x2fa   :  { %1379 = vmatpush3.msra.mxu1 %v478_v59 }
 0x2fe   :  { %v1791_v61 = vpop.eup %1464 }
 0x2ff   :  { %v434_v62 = vsel %vm376_vm1, %v1791_v61, 0.0  ;;  %v1796_v0 = vpop.eup %1466 }
 0x300   :  { %435 = vadd.xlane.f32.xlu0 %v434_v62  ;;  %426 = vadd.xlane.f32.xlu1 %v425_v63  ;;  %v431_v3 = vsel %vm376_vm1, %v1796_v0, 0.0 }
 0x302   :  { %v1798_v1 = vpop.eup %1468 }
 0x303   :  { %v440_v2 = vsel %vm376_vm1, %v1798_v1, 0.0 }
 0x304   :  { %441 = vadd.xlane.f32.xlu0 %v440_v2  ;;  %432 = vadd.xlane.f32.xlu1 %v431_v3  ;;  %v1855_v3 = vld [vmem:[%s1931_s6] sm:$0x7f] }
 0x306   :  { %v1804_v4 = vpop.eup %1470 }
 0x307   :  { %v446_v5 = vsel %vm376_vm1, %v1804_v4, 0.0 }
 0x308   :  { %447 = vadd.xlane.f32.xlu0 %v446_v5 }
 0x317   :  { %v391_v6 = vpop.xlane.xlu1 %390 }
 0x318   :  { %v405_v7 = vsub.f32 %v1768_v29, %v391_v6 }
 0x31a   :  { %v417_v8 = vmul.f32 1.442695, %v405_v7 }
 0x31b   :  { %v476_v9 = vpop.permute.xlu1 %475 }
 0x31c   :  { %1472 = vpow2.f32 %v417_v8  ;;  %1380 = vmatprep.subr.mxu1 %v476_v9 }
 0x31d   :  { %1381 = vmatpush3.msra.mxu1 %v476_v9 }
 0x329   :  { %v1473_v10 = vpop.eup %1472 }
 0x32a   :  { %v437_v11 = vsel %vm376_vm1, %v1473_v10, 0.0 }
 0x32b   :  { %438 = vadd.xlane.f32.xlu1 %v437_v11 }
 0x33c   :  { %465 = vrot.lane.b32.xlu1 %v1681_v34, %s1524_s8  ;;  %v866_v34 = vld [vmem:[%s1928_s3 + $0x18] sm:$0xff] }
 0x33d   :  { %1419 = vmatprep.subr.mxu0 %v866_v34 }
 0x33e   :  { %1420 = vmatpush3.msra.mxu0 %v866_v34 }
 0x34c   :  { %v397_v12 = vpop.xlane.xlu1 %396 }
 0x34d   :  { %v407_v13 = vsub.f32 %v1777_v35, %v397_v12 }
 0x34f   :  { %v421_v14 = vmul.f32 1.442695, %v407_v13 }
 0x350   :  { %v474_v15 = vpop.permute.xlu1 %473 }
 0x351   :  { %1474 = vpow2.f32 %v421_v14  ;;  %1382 = vmatprep.subr.mxu1 %v474_v15 }
 0x352   :  { %1383 = vmatpush3.msra.mxu1 %v474_v15 }
 0x354   :  { %v472_v16 = vpop.permute.xlu1 %471 }
 0x355   :  { %1384 = vmatprep.subr.mxu1 %v472_v16 }
 0x356   :  { %1385 = vmatpush3.msra.mxu1 %v472_v16 }
 0x358   :  { %v470_v17 = vpop.permute.xlu1 %469 }
 0x359   :  { %1386 = vmatprep.subr.mxu1 %v470_v17 }
 0x35a   :  { %1387 = vmatpush3.msra.mxu1 %v470_v17 }
 0x35e   :  { %v1475_v18 = vpop.eup %1474 }
 0x35f   :  { %v443_v20 = vsel %vm376_vm1, %v1475_v18, 0.0 }
 0x360   :  { %444 = vadd.xlane.f32.xlu0 %v443_v20 }
 0x376   :  { %467 = vrot.lane.b32.xlu0 %v1685_v36, %s1524_s8 }
 0x37f   :  { %v430_v25 = vpop.xlane.xlu0 %429 }
 0x389   :  { %v427_v22 = vpop.xlane.xlu1 %426  ;;  %v436_v26 = vpop.xlane.xlu0 %435 }
 0x38a   :  { %1476 = vrcp.f32 %v427_v22 }
 0x38b   :  { %1478 = vrcp.f32 %v430_v25 }
 0x38d   :  { %v433_v27 = vpop.xlane.xlu1 %432  ;;  %v442_v28 = vpop.xlane.xlu0 %441 }
 0x38e   :  { %1480 = vrcp.f32 %v433_v27 }
 0x38f   :  { %1482 = vrcp.f32 %v436_v26 }
 0x391   :  { %v448_v36 = vpop.xlane.xlu0 %447 }
 0x397   :  { %v1477_v23 = vpop.eup %1476 }
 0x398   :  { %v450_v24 = vmul.f32 %v1477_v23, %v1463_v60  ;;  %v1479_v31 = vpop.eup %1478  ;;  %v950_v60 = vlaneseq }
 0x399   :  { %v452_v39 = vmul.f32 %v1479_v31, %v1787_v54  ;;  %v999_v31 = vld [vmem:[%s1929_s4 + $0x8] sm:$0xff] }
 0x39a   :  { %1392 = vmatprep.mubr.msk.f32.mxu1 %vm376_vm1, %v450_v24  ;;  %v1849_v62 = vshrl.u32 %v950_v60, 7  ;;  %v1093_v60 = vld [vmem:[%s1930_s5] sm:$0xff] }
 0x39b   :  { %v1481_v33 = vpop.eup %1480 }
 0x39c   :  { %v1483_v41 = vpop.eup %1482  ;;  %v454_v43 = vmul.f32 %v1481_v33, %v1796_v0  ;;  %v1100_v33 = vld [vmem:[%s1930_s5 + $0x38] sm:$0xff] }
 0x39d   :  { %v456_v45 = vmul.f32 %v1483_v41, %v1791_v61  ;;  %1435 = vmatprep.subr.mxu0 %v1100_v33 }
 0x3b4   :  { %v439_v29 = vpop.xlane.xlu1 %438 }
 0x3b5   :  { %1484 = vrcp.f32 %v439_v29 }
 0x3b6   :  { %1486 = vrcp.f32 %v442_v28 }
 0x3b8   :  { %v466_v35 = vpop.permute.xlu1 %465 }
 0x3c2   :  { %v1485_v44 = vpop.eup %1484 }
 0x3c3   :  { %v1487_v46 = vpop.eup %1486  ;;  %v458_v47 = vmul.f32 %v1485_v44, %v1473_v10 }
 0x3c4   :  { %v460_v49 = vmul.f32 %v1487_v46, %v1798_v1  ;;  %v952_v1 = vsub.s32 0, %v1849_v62 }
 0x3c6   :  { %v953_v9 = vrot.slane %v1855_v3, %v952_v1 }
 0x3e9   :  { %v445_v30 = vpop.xlane.xlu0 %444 }
 0x3ea   :  { %1488 = vrcp.f32 %v445_v30  ;;  %v1000_v30 = vld [vmem:[%s1929_s4 + $0x10] sm:$0xff] }
 0x3eb   :  { %1490 = vrcp.f32 %v448_v36 }
 0x3ed   :  { %v468_v32 = vpop.permute.xlu0 %467 }
 0x3ee   :  { %1388 = vmatprep.subr.mxu1 %v468_v32 }
 0x3ef   :  { %1389 = vmatpush3.msra.mxu1 %v468_v32  ;;  %v998_v32 = vld [vmem:[%s1929_s4] sm:$0xff] }
 0x3f0   :  { %1390 = vmatprep.subr.mxu1 %v466_v35 }
 0x3f1   :  { %1391 = vmatpush3.msra.mxu1 %v466_v35  ;;  %v1099_v35 = vld [vmem:[%s1930_s5 + $0x30] sm:$0xff] }
 0x3f2   :  { %1393 = vmatmul.mubr.msk.f32.vlgmr.msra.gmra.mxu1 %vm376_vm1, %v452_v39  ;;  %1404 = vmatprep.subr.mxu1 %v619_v37  ;;  %v1097_v39 = vld [vmem:[%s1930_s5 + $0x20] sm:$0xff] }
 0x3f3   :  { %1395 = vmatprep.mubr.msk.f32.mxu1 %vm376_vm1, %v454_v43  ;;  %1405 = vmatpush3.msra.mxu1 %v619_v37  ;;  %v1098_v37 = vld [vmem:[%s1930_s5 + $0x28] sm:$0xff] }
 0x3f4   :  { %1409 = vmatprep.subr.mxu1 %v618_v40 }
 0x3f6   :  { %1396 = vmatmul.mubr.msk.f32.gmra.mxu1 %vm376_vm1, %v456_v45 }
 0x3f7   :  { %v1489_v48 = vpop.eup %1488  ;;  %1398 = vmatprep.mubr.msk.f32.mxu1 %vm376_vm1, %v458_v47 }
 0x3f8   :  { %v462_v50 = vmul.f32 %v1489_v48, %v1475_v18  ;;  %v1491_v42 = vpop.eup %1490  ;;  %v988_v48 = vsub.s32 3, %v1849_v62 }
 0x3f9   :  { %v464_v51 = vmul.f32 %v1491_v42, %v1804_v4 }
 0x3fa   :  { %1399 = vmatmul.mubr.msk.f32.gmra.mxu1 %vm376_vm1, %v460_v49  ;;  %v994_v49 = vsub.s32 4, %v1849_v62 }
 0x3fb   :  { %1401 = vmatprep.mubr.msk.f32.mxu1 %vm376_vm1, %v462_v50  ;;  %v989_v50 = vrot.slane %v1855_v3, %v988_v48 }
 0x3fe   :  { %1402 = vmatmul.mubr.msk.f32.gmra.mxu1 %vm376_vm1, %v464_v51 }
 0x4b2   :  { %v1394_v52 = vpop.f32.mrf.mxu1 }
 0x4b4   :  { %v579_v38 = vpop.f32.mrf.mxu1 }
 0x4b6   :  { %v1397_v53 = vpop.f32.mrf.mxu1 }
 0x4b8   :  { %v589_v54 = vpop.f32.mrf.mxu1 }
 0x4b9   :  { %1406 = vmatprep.mubr.msk.f32.mxu1 %vm61_vm0, %v589_v54 }
 0x4ba   :  { %v1400_v56 = vpop.f32.mrf.mxu1  ;;  %1407 = vmatmul.mubr.msk.f32.vlgmr.msra.gmra.mxu1 %vm61_vm0, %v1397_v53 }
 0x4bb   :  { %1410 = vmatpush3.msra.mxu1 %v618_v40  ;;  %1411 = vmatprep.mubr.msk.f32.mxu1 %vm61_vm0, %v579_v38  ;;  %v995_v40 = vrot.slane %v1855_v3, %v994_v49 }
 0x4bc   :  { %v599_v57 = vpop.f32.mrf.mxu1  ;;  %1414 = vmatprep.subr.mxu1 %v782_v55 }
 0x4be   :  { %v1403_v58 = vpop.f32.mrf.mxu1  ;;  %1412 = vmatmul.mubr.msk.f32.vlgmr.msra.gmra.mxu1 %vm61_vm0, %v1394_v52 }
 0x4bf   :  { %1415 = vmatpush3.msra.mxu1 %v782_v55  ;;  %1416 = vmatprep.mubr.msk.f32.mxu1 %vm61_vm0, %v599_v57  ;;  %v1096_v57 = vld [vmem:[%s1930_s5 + $0x18] sm:$0xff] }
 0x4c0   :  { %v609_v59 = vpop.f32.mrf.mxu1 }
 0x4c1   :  { %1421 = vmatprep.mubr.msk.f32.mxu0 %vm61_vm0, %v609_v59  ;;  %v1094_v59 = vld [vmem:[%s1930_s5 + $0x8] sm:$0xff] }
 0x4c2   :  { %1417 = vmatmul.mubr.msk.f32.vlgmr.msra.gmra.mxu1 %vm61_vm0, %v1400_v56  ;;  %1422 = vmatmul.mubr.msk.f32.vlgmr.msra.gmra.mxu0 %vm61_vm0, %v1403_v58  ;;  %v1095_v58 = vld [vmem:[%s1930_s5 + $0x10] sm:$0xff]  ;;  %s1525_s5 = smov [#allocation2]  }
 0x4c3   :  { %1436 = vmatpush3.msra.mxu0 %v1100_v33  ;;  %v1216_v33 = vsub.s32 5, %v1849_v62  ;;  %s1233_s17 = sshll.u32 %s1525_s5, 4  ;;  %s1234_s17 = int_to_ptr.vmem [resolvable:$true] %s1233_s17 }
 0x4c4   :  { %1437 = vmatprep.subr.mxu0 %v1099_v35  ;;  %s1500_s18 = scalar_lea.vmem %s1234_s17, 256  ;;  %p1505_p1 = scmp.lt.s32.totalorder %s1234_s17, %s1234_s17 }
 0x4c5   :  { %1438 = vmatpush3.msra.mxu0 %v1099_v35  ;;  %v1222_v35 = vsub.s32 6, %v1849_v62  ;;  %p1501_p0 = scmp.ne.s32.totalorder %s1234_s17, %s1500_s18  ;;  %p1506_p2 = scmp.lt.s32.totalorder %s1500_s18, %s1500_s18 }
 0x4c6   :  { %1439 = vmatprep.subr.mxu0 %v1098_v37 }
 0x4c7   :  { %1440 = vmatpush3.msra.mxu0 %v1098_v37  ;;  %v1217_v37 = vrot.slane %v1855_v3, %v1216_v33  ;;  %p1507_p3 = por %p1506_p2, %p1505_p1 }
 0x4c8   :  { %1441 = vmatprep.subr.mxu0 %v1097_v39 }
 0x4c9   :  { %1442 = vmatpush3.msra.mxu0 %v1097_v39  ;;  %p1508_p4 = pnand %p1507_p3, %p1501_p0 }
 0x4ca   :  { %1443 = vmatprep.subr.mxu0 %v1096_v57 }
 0x4cb   :  { %1444 = vmatpush3.msra.mxu0 %v1096_v57 }
 0x4cc   :  { %1445 = vmatprep.subr.mxu0 %v1095_v58 }
 0x4cd   :  { %1446 = vmatpush3.msra.mxu0 %v1095_v58 }
 0x4ce   :  { %1447 = vmatprep.subr.mxu0 %v1094_v59 }
 0x4cf   :  { %1448 = vmatpush3.msra.mxu0 %v1094_v59 }
 0x4d0   :  { %1449 = vmatprep.subr.mxu0 %v1093_v60 }
 0x4d1   :  { %1450 = vmatpush3.msra.mxu0 %v1093_v60 }
 0x57a   :  { %v1408_v61 = vpop.f32.mrf.mxu1 }
 0x57c   :  { %v692_v63 = vpop.f32.mrf.mxu1 }
 0x57e   :  { %v1413_v0 = vpop.f32.mrf.mxu1 }
 0x57f   :  { %v779_v4 = vadd.f32 %v1413_v0, %v1408_v61  ;;  %v1004_v61 = vsub.s32 1, %v1849_v62 }
 0x580   :  { %v773_v2 = vpop.f32.mrf.mxu1 }
 0x581   :  { %v774_v7 = vadd.f32 %v773_v2, %v692_v63  ;;  %v1005_v63 = vrot.slane %v1855_v3, %v1004_v61 }
 0x582   :  { %v1418_v5 = vpop.f32.mrf.mxu1  ;;  %v1423_v6 = vpop.f32.mrf.mxu0 }
 0x583   :  { %v865_v8 = vadd.f32 %v1418_v5, %v779_v4 }
 0x584   :  { %v855_v10 = vpop.f32.mrf.mxu1  ;;  %v939_v13 = vpop.f32.mrf.mxu0 }
 0x585   :  { %v949_v11 = vadd.f32 %v1423_v6, %v865_v8  ;;  %v864_v12 = vadd.f32 %v855_v10, %v774_v7 }
 0x587   :  { %v955_v14 = vadd.f32 %v953_v9, %v949_v11  ;;  %v948_v15 = vadd.f32 %v939_v13, %v864_v12 }
 0x589   :  { %v954_v16 = vadd.f32 %v953_v9, %v948_v15  ;;  %v957_v17 = vadd.f32 %v955_v14, %v1636_v21  ;;  %v1103_v9 = vsub.s32 2, %v1849_v62 }
 0x58b   :  { %v962_v18 = vsel %vm958_vm2, %v957_v17, 0.0  ;;  %v956_v20 = vadd.f32 %v954_v16, %v1626_v19  ;;  %v1001_v19 = vld [vmem:[%s1929_s4 + $0x18] sm:$0xff]  ;;  %v1104_v10 = vrot.slane %v1855_v3, %v1103_v9 }
 0x58c   :  { %963 = vadd.xlane.f32.xlu1 %v962_v18  ;;  %1424 = vmatprep.subr.mxu1 %v1001_v19 }
 0x58d   :  { %v959_v34 = vsel %vm958_vm2, %v956_v20, 0.0  ;;  %1425 = vmatpush3.msra.mxu1 %v1001_v19 }
 0x58e   :  { %960 = vadd.xlane.f32.xlu0 %v959_v34  ;;  %1426 = vmatprep.subr.mxu1 %v1000_v30 }
 0x58f   :  { %1427 = vmatpush3.msra.mxu1 %v1000_v30 }
 0x590   :  { %1428 = vmatprep.subr.mxu1 %v999_v31 }
 0x591   :  { %1429 = vmatpush3.msra.mxu1 %v999_v31 }
 0x592   :  { %1430 = vmatprep.subr.mxu1 %v998_v32 }
 0x593   :  { %1431 = vmatpush3.msra.mxu1 %v998_v32 }
 0x615   :  { %v964_v22 = vpop.xlane.xlu1 %963 }
 0x616   :  { %v967_v23 = vmul.f32 0.03125, %v964_v22 }
 0x617   :  { %v961_v24 = vpop.xlane.xlu0 %960 }
 0x618   :  { %v966_v25 = vmul.f32 0.03125, %v961_v24  ;;  %v969_v26 = vsub.f32 %v957_v17, %v967_v23 }
 0x61a   :  { %v968_v27 = vsub.f32 %v956_v20, %v966_v25  ;;  %v971_v36 = vmul.f32 %v969_v26, %v969_v26 }
 0x61c   :  { %v970_v28 = vmul.f32 %v968_v27, %v968_v27  ;;  %v975_v21 = vsel %vm958_vm2, %v971_v36, 0.0 }
 0x61e   :  { %v972_v29 = vsel %vm958_vm2, %v970_v28, 0.0 }
 0x61f   :  { %973 = vadd.xlane.f32.xlu0 %v972_v29 }
 0x623   :  { %976 = vadd.xlane.f32.xlu0 %v975_v21 }
 0x6a8   :  { %v974_v41 = vpop.xlane.xlu0 %973 }
 0x6a9   :  { %v978_v43 = vmul.f32 0.03125, %v974_v41 }
 0x6ab   :  { %v980_v44 = vadd.f32 1e-05, %v978_v43  ;;  %v1223_v43 = vrot.slane %v1855_v3, %v1222_v35 }
 0x6ac   :  { %v977_v45 = vpop.xlane.xlu0 %976 }
 0x6ad   :  { %1492 = vrsqrt.f32 %v980_v44  ;;  %v979_v46 = vmul.f32 0.03125, %v977_v45 }
 0x6af   :  { %v981_v47 = vadd.f32 1e-05, %v979_v46 }
 0x6b1   :  { %1494 = vrsqrt.f32 %v981_v47 }
 0x6ba   :  { %v1493_v42 = vpop.eup %1492 }
 0x6bb   :  { %v984_v51 = vmul.f32 %v1493_v42, %v968_v27 }
 0x6bd   :  { %v990_v52 = vmul.f32 %v989_v50, %v984_v51 }
 0x6be   :  { %v1495_v38 = vpop.eup %1494 }
 0x6bf   :  { %v985_v53 = vmul.f32 %v1495_v38, %v969_v26  ;;  %v996_v54 = vadd.f32 %v995_v40, %v990_v52 }
 0x6c1   :  { %v991_v55 = vmul.f32 %v989_v50, %v985_v53  ;;  %1432 = vmatprep.mubr.msk.f32.mxu1 %vm958_vm2, %v996_v54 }
 0x6c3   :  { %v997_v56 = vadd.f32 %v995_v40, %v991_v55 }
 0x6c5   :  { %1433 = vmatmul.mubr.msk.f32.vlgmr.msra.gmra.mxu1 %vm958_vm2, %v997_v56 }
 0x785   :  { %v1434_v0 = vpop.f32.mrf.mxu1 }
 0x786   :  { %v1084_v1 = vadd.f32 %v1434_v0, %v1005_v63 }
 0x787   :  { %v1078_v2 = vpop.f32.mrf.mxu1 }
 0x788   :  { %v1079_v4 = vadd.f32 %v1078_v2, %v1005_v63  ;;  %v1090_v5 = vmul.f32 0.01, %v1084_v1  ;;  %vm1088_vm3 = vcmp.gt.f32.partialorder %v1084_v1, 0.0 }
 0x78a   :  { %vm1087_vm4 = vcmp.gt.f32.partialorder %v1079_v4, 0.0  ;;  %v1089_v6 = vmul.f32 0.01, %v1079_v4  ;;  %v1092_v8 = vsel %vm1088_vm3, %v1084_v1, %v1090_v5 }
 0x78c   :  { %v1091_v7 = vsel %vm1087_vm4, %v1079_v4, %v1089_v6 }
 0x78d   :  { %1451 = vmatprep.mubr.msk.f32.mxu0 %vm376_vm1, %v1091_v7 }
 0x78e   :  { %1452 = vmatmul.mubr.msk.f32.vlgmr.msra.gmra.mxu0 %vm376_vm1, %v1092_v8 }
 0x84e   :  { %v1453_v11 = vpop.f32.mrf.mxu0 }
 0x84f   :  { %v1183_v12 = vadd.f32 %v1453_v11, %v1104_v10 }
 0x850   :  { %v1177_v13 = vpop.f32.mrf.mxu0 }
 0x851   :  { %v1178_v14 = vadd.f32 %v1177_v13, %v1104_v10  ;;  %v1187_v15 = vadd.f32 %v1183_v12, %v997_v56 }
 0x853   :  { %v1191_v16 = vsel %vm958_vm2, %v1187_v15, 0.0  ;;  %v1186_v17 = vadd.f32 %v1178_v14, %v996_v54 }
 0x854   :  { %1192 = vadd.xlane.f32.xlu0 %v1191_v16 }
 0x855   :  { %v1188_v18 = vsel %vm958_vm2, %v1186_v17, 0.0 }
 0x856   :  { %1189 = vadd.xlane.f32.xlu1 %v1188_v18 }
 0x8dd   :  { %v1193_v20 = vpop.xlane.xlu0 %1192 }
 0x8de   :  { %v1195_v34 = vmul.f32 0.03125, %v1193_v20 }
 0x8df   :  { %v1190_v22 = vpop.xlane.xlu1 %1189 }
 0x8e0   :  { %v1197_v23 = vsub.f32 %v1187_v15, %v1195_v34  ;;  %v1194_v24 = vmul.f32 0.03125, %v1190_v22 }
 0x8e2   :  { %v1196_v25 = vsub.f32 %v1186_v17, %v1194_v24  ;;  %v1199_v26 = vmul.f32 %v1197_v23, %v1197_v23 }
 0x8e4   :  { %v1203_v27 = vsel %vm958_vm2, %v1199_v26, 0.0  ;;  %v1198_v28 = vmul.f32 %v1196_v25, %v1196_v25 }
 0x8e5   :  { %1204 = vadd.xlane.f32.xlu0 %v1203_v27 }
 0x8e6   :  { %v1200_v29 = vsel %vm958_vm2, %v1198_v28, 0.0 }
 0x8e7   :  { %1201 = vadd.xlane.f32.xlu1 %v1200_v29 }
 0x96e   :  { %v1205_v36 = vpop.xlane.xlu0 %1204 }
 0x96f   :  { %v1207_v21 = vmul.f32 0.03125, %v1205_v36 }
 0x970   :  { %v1202_v19 = vpop.xlane.xlu1 %1201 }
 0x971   :  { %v1209_v30 = vadd.f32 1e-05, %v1207_v21  ;;  %v1206_v31 = vmul.f32 0.03125, %v1202_v19 }
 0x973   :  { %1496 = vrsqrt.f32 %v1209_v30  ;;  %v1208_v32 = vadd.f32 1e-05, %v1206_v31 }
 0x975   :  { %1498 = vrsqrt.f32 %v1208_v32 }
 0x980   :  { %v1497_v39 = vpop.eup %1496 }
 0x981   :  { %v1213_v41 = vmul.f32 %v1497_v39, %v1197_v23 }
 0x982   :  { %v1499_v44 = vpop.eup %1498 }
 0x983   :  { %v1212_v45 = vmul.f32 %v1499_v44, %v1196_v25  ;;  %v1219_v46 = vmul.f32 %v1217_v37, %v1213_v41 }
 0x985   :  { %v1218_v47 = vmul.f32 %v1217_v37, %v1212_v45  ;;  %v1225_v48 = vadd.f32 %v1223_v43, %v1219_v46 }
 0x987   :  { %v1224_v49 = vadd.f32 %v1223_v43, %v1218_v47  ;;  %1227 = vst.msk [vmem:[#allocation2 + $0x8] sm:$0xff] %vm958_vm2, %v1225_v48 }
 0x989   :  { %1226 = vst.msk [vmem:[#allocation2] sm:$0xff] %vm958_vm2, %v1224_v49 }
 0x98a   :  { %1511 = shalt.err (!%p1508_p4)
}
 0x98b   :  { %s1526_s19 = smov 128   ;;  %s1527_s3 = smov 8  }
 0x98c   :  { %1239 = dma.vmem_to_hbm [thread:$0]  %s1234_s17, 256, %s1932_s7, [#allocation3], %s1526_s19, %s1526_s19, %s1527_s3  }
 0x98d   :  { %1520 = dma.done.wait [#allocation3], 256  }
 0x98e   :  { %1521 = vsyncadd [#allocation3], 4294967040 }
 0x98f   :  { %1243 = vsyncpa [#allocation3], 1 }

</bundles_post_ra>
